<compile_context>
chip_gen: v5e
topology: v5e:2x2
jax: 0.10.0
libtpu: 0.0.40
codegen_flags: <defaults>
</compile_context>

<pallas_src>
import functools

import jax
import jax.numpy as jnp
from jax.experimental import pallas as pl
from jax.experimental.pallas import tpu as pltpu


def _round_up(x, m):
    return ((x + m - 1) // m) * m


def _maxout_kernel(x_ref, w_ref, b_ref, o_ref, *, pool_size, tn):
    # x_ref : (tm, d_in)            activations (any float dtype)
    # w_ref : (d_in, pool*tn)       wide weight tile (bf16 by default)
    # b_ref : (1, pool*tn)          wide bias tile
    # o_ref : (tm, tn)              lane-dense output tile
    x = x_ref[...]
    w = w_ref[...]
    if x.dtype != w.dtype:
        x = x.astype(w.dtype)          # feed the MXU bf16; accumulate in f32
    # One wide MXU matmul per grid step (pool candidates fused into the RHS).
    wide = jnp.dot(x, w, preferred_element_type=jnp.float32)
    wide = wide + b_ref[...].astype(jnp.float32)         # broadcast over rows
    # Maxout: max over pool candidates = static lane-contiguous slabs -> VPU.
    acc = wide[:, 0:tn]
    for p in range(1, pool_size):                         # pool_size is static
        acc = jnp.maximum(acc, wide[:, p * tn:(p + 1) * tn])
    o_ref[...] = acc.astype(o_ref.dtype)


def prepare_maxout_params(weight, bias, d_out, pool_size, *, block_n=128,
                          compute_dtype=jnp.bfloat16):
    """One-time re-layout of nn.Linear(d_in, d_out*pool) parameters.

    Call this once at parameter-load time (NOT per forward call).

    weight : (d_out*pool, d_in), bias : (d_out*pool,)  -- PyTorch layout.
    Wide layout:
      w_wide[k, j*pool*tn + p*tn + q] = weight[(j*tn + q)*pool + p, k]
      b_wide[0, j*pool*tn + p*tn + q] = bias[(j*tn + q)*pool + p]
    so that x @ w_wide yields, per N tile j, pool contiguous (tm, tn) slabs.
    """
    d_in = weight.shape[1]
    assert weight.shape == (d_out * pool_size, d_in)
    assert bias.shape == (d_out * pool_size,)

    # N tile: the full d_out when small, else 128-lane tiles (pad d_out).
    tn = d_out if d_out <= block_n else block_n
    d_out_pad = _round_up(d_out, tn)
    n_tiles = d_out_pad // tn

    w_r = weight.reshape(d_out, pool_size, d_in)       # [j, p, k]
    b_r = bias.reshape(d_out, pool_size)               # [j, p]
    if d_out_pad != d_out:
        w_r = jnp.pad(w_r, ((0, d_out_pad - d_out), (0, 0), (0, 0)))
        b_r = jnp.pad(b_r, ((0, d_out_pad - d_out), (0, 0)))

    w4 = w_r.reshape(n_tiles, tn, pool_size, d_in)      # [j, q, p, k]
    w_wide = jnp.transpose(w4, (3, 0, 2, 1)).reshape(
        d_in, n_tiles * pool_size * tn)
    b_wide = jnp.transpose(b_r.reshape(n_tiles, tn, pool_size),
                           (0, 2, 1)).reshape(1, n_tiles * pool_size * tn)

    return dict(
        w_wide=w_wide.astype(compute_dtype),
        b_wide=b_wide.astype(compute_dtype),
        d_in=d_in, d_out=d_out, d_out_pad=d_out_pad,
        pool_size=pool_size, tn=tn,
    )


def maxout_forward(x, params, *, block_m=512):
    """x: (..., d_in) -> (..., d_out). `params` from prepare_maxout_params."""
    w_wide, b_wide = params["w_wide"], params["b_wide"]
    d_in, d_out = params["d_in"], params["d_out"]
    d_out_pad, pool, tn = params["d_out_pad"], params["pool_size"], params["tn"]

    orig_shape = x.shape
    assert orig_shape[-1] == d_in

    # Flatten leading dims into one row axis (metadata-only reshape; no copy,
    # no full-array jnp.pad — the ragged last row tile is masked by Pallas).
    x2 = x.reshape(-1, d_in)
    M = x2.shape[0]
    tm = min(block_m, _round_up(M, 8))        # multiple of 8 sublanes
    grid = (pl.cdiv(M, tm), d_out_pad // tn)

    # Explicit VMEM budget from the actual tile arithmetic (double buffers),
    # clamped to v7x's 64 MiB per-core physical VMEM.
    xb = jnp.dtype(x.dtype).itemsize
    wb = jnp.dtype(w_wide.dtype).itemsize
    needed = (2 * tm * d_in * xb                  # x tiles
              + 2 * (d_in + 1) * pool * tn * wb   # weight + bias tiles
              + 2 * tm * tn * xb)                 # output tiles
    vmem_limit = int(min(max(2 * needed + (4 << 20), 32 << 20), 64 << 20))

    kernel = functools.partial(_maxout_kernel, pool_size=pool, tn=tn)
    out = pl.pallas_call(
        kernel,
        out_shape=jax.ShapeDtypeStruct((M, d_out_pad), x.dtype),
        grid_spec=pltpu.PrefetchScalarGridSpec(
            num_scalar_prefetch=0,
            grid=grid,
            in_specs=[
                pl.BlockSpec((tm, d_in), lambda i, j: (i, 0)),
                # NOTE: when n_tiles == 1 these block indices are constant; a
                # pipeline_mode=pl.Buffered(1) here would drop the second
                # buffer of the resident weight if VMEM ever gets tight.
                pl.BlockSpec((d_in, pool * tn), lambda i, j: (0, j)),
                pl.BlockSpec((1, pool * tn), lambda i, j: (0, j)),
            ],
            out_specs=pl.BlockSpec((tm, tn), lambda i, j: (i, j)),
        ),
        compiler_params=pltpu.CompilerParams(
            dimension_semantics=("parallel", "parallel"),
            vmem_limit_bytes=vmem_limit,
        ),
    )(x2, w_wide, b_wide)

    return out[:, :d_out].reshape(orig_shape[:-1] + (d_out,))


def maxout_reference(x, weight, bias, d_out, pool_size):
    """Pure-JAX f32 reference mirroring the PyTorch forward exactly."""
    out = x @ weight.T + bias                               # (..., d_out*pool)
    out = out.reshape(x.shape[:-1] + (d_out, pool_size))    # (..., d_out, pool)
    return jnp.max(out, axis=-1)                            # (..., d_out)


if __name__ == "__main__":
    batch, seq = 2, 8
    d_in, d_out, pool_size = 32, 32, 2

    key = jax.random.PRNGKey(0)
    k1, k2, k3 = jax.random.split(key, 3)

    # Parameters in PyTorch nn.Linear(d_in, d_out*pool_size) layout.
    weight = jax.random.normal(k1, (d_out * pool_size, d_in), jnp.float32) * 0.1
    bias = jax.random.normal(k2, (d_out * pool_size,), jnp.float32) * 0.1
    x = jax.random.normal(k3, (batch, seq, d_in), jnp.float32)

    ref = maxout_reference(x, weight, bias, d_out, pool_size)

    # Production path: bf16 MXU feeding, f32 accumulation (looser tolerance).
    params_bf16 = prepare_maxout_params(weight, bias, d_out, pool_size)
    fwd_bf16 = jax.jit(lambda xx: maxout_forward(xx, params_bf16))
    out_bf16 = jax.block_until_ready(fwd_bf16(x))
    assert out_bf16.shape == (batch, seq, d_out)
    assert jnp.allclose(out_bf16, ref, atol=2e-2, rtol=2e-2), \
        "bf16 kernel mismatch vs reference"

    # f32 compute path: tight check of the kernel's indexing / wide layout.
    params_f32 = prepare_maxout_params(weight, bias, d_out, pool_size,
                                       compute_dtype=jnp.float32)
    fwd_f32 = jax.jit(lambda xx: maxout_forward(xx, params_f32))
    out_f32 = jax.block_until_ready(fwd_f32(x))
    assert jnp.allclose(out_f32, ref, atol=1e-5, rtol=1e-5), \
        "f32 kernel mismatch vs reference"

    print("KERNEL_OK")
</pallas_src>

<mosaic_0001>
module attributes {stable_mosaic.version = 11 : i64} {
  func.func @_maxout_kernel(%arg0: i32, %arg1: i32, %arg2: memref<16x32xf32, #tpu.memory_space<vmem>>, %arg3: memref<32x64xbf16, #tpu.memory_space<vmem>>, %arg4: memref<1x64xbf16, #tpu.memory_space<vmem>>, %arg5: memref<16x32xf32, #tpu.memory_space<vmem>>) attributes {dimension_semantics = [#tpu.dimension_semantics<parallel>, #tpu.dimension_semantics<parallel>], iteration_bounds = array<i64: 1, 1>, scalar_prefetch = 0 : i64, scratch_operands = 0 : i64, tpu.core_type = #tpu.core_type<tc>, window_params = [{transform_indices = @transform_0, window_bounds = array<i64: 16, 32>}, {transform_indices = @transform_1, window_bounds = array<i64: 32, 64>}, {transform_indices = @transform_2, window_bounds = array<i64: 1, 64>}, {transform_indices = @transform_3, window_bounds = array<i64: 16, 32>}]} {
    %c0 = arith.constant 0 : index
    %c0_0 = arith.constant 0 : index
    %0 = vector.load %arg2[%c0, %c0_0] : memref<16x32xf32, #tpu.memory_space<vmem>>, vector<16x32xf32>
    %c0_1 = arith.constant 0 : index
    %c0_2 = arith.constant 0 : index
    %1 = vector.load %arg3[%c0_1, %c0_2] : memref<32x64xbf16, #tpu.memory_space<vmem>>, vector<32x64xbf16>
    %2 = arith.truncf %0 : vector<16x32xf32> to vector<16x32xbf16>
    %cst = arith.constant dense<0.000000e+00> : vector<16x64xf32>
    %3 = tpu.matmul %2, %1, %cst {dimension_numbers = #tpu.dot_dimension_numbers<[1], [0], [0], [1], [0, 0, 1, 1], [], []>} : vector<16x32xbf16>, vector<32x64xbf16>, vector<16x64xf32> -> vector<16x64xf32>
    %c0_3 = arith.constant 0 : index
    %c0_4 = arith.constant 0 : index
    %4 = vector.load %arg4[%c0_3, %c0_4] : memref<1x64xbf16, #tpu.memory_space<vmem>>, vector<1x64xbf16>
    %5 = arith.extf %4 : vector<1x64xbf16> to vector<1x64xf32>
    %6 = vector.broadcast %5 : vector<1x64xf32> to vector<16x64xf32>
    %7 = arith.addf %3, %6 : vector<16x64xf32>
    %8 = vector.extract_strided_slice %7 {offsets = [0, 0], sizes = [16, 32], strides = [1, 1]} : vector<16x64xf32> to vector<16x32xf32>
    %9 = vector.extract_strided_slice %7 {offsets = [0, 32], sizes = [16, 32], strides = [1, 1]} : vector<16x64xf32> to vector<16x32xf32>
    %10 = arith.maximumf %8, %9 : vector<16x32xf32>
    %c0_5 = arith.constant 0 : index
    %c0_6 = arith.constant 0 : index
    %11 = vector.load %arg5[%c0_5, %c0_6] : memref<16x32xf32, #tpu.memory_space<vmem>>, vector<16x32xf32>
    tpu.vector_store %arg5[%c0_5, %c0_6], %10 {strides = array<i32>} : memref<16x32xf32, #tpu.memory_space<vmem>>, vector<16x32xf32>,
    return
  }
  func.func @transform_0(%arg0: i32, %arg1: i32) -> (i32, i32) {
    %c0_i32 = arith.constant 0 : i32
    %c0_i32_0 = arith.constant 0 : i32
    return %arg0, %c0_i32 : i32, i32
  }
  func.func @transform_1(%arg0: i32, %arg1: i32) -> (i32, i32) {
    %c0_i32 = arith.constant 0 : i32
    %c0_i32_0 = arith.constant 0 : i32
    return %c0_i32, %arg1 : i32, i32
  }
  func.func @transform_2(%arg0: i32, %arg1: i32) -> (i32, i32) {
    %c0_i32 = arith.constant 0 : i32
    %c0_i32_0 = arith.constant 0 : i32
    return %c0_i32, %arg1 : i32, i32
  }
  func.func @transform_3(%arg0: i32, %arg1: i32) -> (i32, i32) {
    %c0_i32 = arith.constant 0 : i32
    return %arg0, %arg1 : i32, i32
  }
}

</mosaic_0001>

<bundles_post_ra>
// kernel: _lambda_.1
= control target key start
LH: loop header
LB: loop body
LE: loop exit
PB: predicated region body
PF: predicated region fallthrough
CT: control target
= control target key end

     0   :  { %8 = vsyncpa [#allocation3], 0  ;;  %s266_s0 = inlined_call_operand.hbm [shape: f32[16,32], index: 0, kind: input, shape index: {}]   ;;  %s267_s1 = inlined_call_operand.hbm [shape: bf16[32,64], index: 1, kind: input, shape index: {}]   ;;  %s268_s2 = inlined_call_operand.vmem [shape: bf16[1,64], index: 2, kind: input, shape index: {}]   ;;  %s269_s3 = inlined_call_operand.hbm [shape: f32[16,32], index: 3, kind: output, shape index: {}]  }
   0x1   :  { %9 = vsyncpa [#allocation6], 0 }
   0x2   :  { %10 = vsyncpa [#allocation4], 0  ;;  %s15_s14 = sshll.u32 %s266_s0, 4  ;;  %s217_s15 = smov [#allocation2]   ;;  %s16_s14 = int_to_ptr.hbm [resolvable:$true] %s15_s14 }
   0x3   :  { %s17_s16 = sshll.u32 %s217_s15, 4  ;;  %s28_s19 = sshll.u32 %s267_s1, 4  ;;  %s18_s16 = int_to_ptr.vmem [resolvable:$true] %s17_s16  ;;  %s29_s19 = int_to_ptr.hbm [resolvable:$true] %s28_s19 }
   0x4   :  { %s218_s20 = smov 128   ;;  %s219_s21 = smov 8  }
   0x5   :  { %23 = dma.hbm_to_vmem [thread:$0]  %s16_s14, 256, %s18_s16, [#allocation3], %s218_s20, %s218_s20, %s219_s21  }
   0x6   :  { %s220_s22 = smov [#allocation5]   ;;  %s221_s24 = smov 64  }
   0x7   :  { %s30_s23 = sshll.u32 %s220_s22, 4  ;;  %s222_s0 = smov 4   ;;  %s31_s23 = int_to_ptr.vmem [resolvable:$true] %s30_s23 }
   0x8   :  { %36 = dma.hbm_to_vmem [thread:$0]  %s29_s19, 256, %s31_s23, [#allocation6], %s221_s24, %s221_s24, %s222_s0  }
   0x9   :  { %211 = dma.done.wait [#allocation3], 256  }
   0xa   :  { %212 = vsyncadd [#allocation3], 4294967040 }
   0xb   :  { %213 = dma.done.wait [#allocation6], 256  }
   0xc   :  { %214 = vsyncadd [#allocation6], 4294967040  ;;  %v130_v0 = vld [vmem:[#allocation5 + $0x8] sm:$0xff]  ;;  %v129_v1 = vld [vmem:[#allocation5] sm:$0xff]  ;;  %vm70_vm0 = vcmask 261120   ;;  %s223_s26 = smov 96  }
   0xd   :  { %80 = vmatpush.bf16.msra.mxu0 %v130_v0  ;;  %v48_v2 = vld [vmem:[#allocation2] sm:$0xff]  ;;  %v49_v3 = vld [vmem:[#allocation2 + $0x8] sm:$0xff]  ;;  %s224_s27 = smov [#allocation7]   ;;  %s106_s4 = sshll.u32 %s269_s3, 4  ;;  %s107_s4 = int_to_ptr.hbm [resolvable:$true] %s106_s4 }
   0xe   :  { %v54_v4 = vpack.c.bf16 %v49_v3, %v48_v2  ;;  %v55_v5 = vld [vmem:[%s268_s2] sm:$0x1]  ;;  %s104_s28 = sshll.u32 %s224_s27, 4  ;;  %s105_s28 = int_to_ptr.vmem [resolvable:$true] %s104_s28 }
   0xf   :  { %v56_v6 = vunpack.c.l.bf16 %v55_v5 }
  0x11   :  { %81 = vmatpush.bf16.msra.mxu0 %v129_v1  ;;  %v57_v7 = vperm.slane %v56_v6, 0 }
  0x14   :  { %128 = vmatmul.msk.bf16.vlgmr.msra.gmra.mxu0 %vm70_vm0, %v54_v4 }
  0x91   :  { %v83_v8 = vpop.f32.mrf.mxu0 }
  0x92   :  { %v84_v9 = vadd.f32 %v83_v8, %v57_v7 }
  0x94   :  { %90 = vrot.lane.b32.xlu0 %v84_v9, %s223_s26 }
  0x99   :  { %v85_v10 = vpop.f32.mrf.mxu0 }
  0x9a   :  { %v86_v11 = vadd.f32 %v85_v10, %v57_v7 }
  0x9c   :  { %92 = vrot.lane.b32.xlu0 %v86_v11, %s223_s26 }
 0x106   :  { %v91_v12 = vpop.permute.xlu0 %90 }
 0x107   :  { %v96_v13 = vmax.f32 %v84_v9, %v91_v12 }
 0x109   :  { %98 = vst.msk [vmem:[#allocation7] sm:$0xff] %vm70_vm0, %v96_v13 }
 0x10e   :  { %v93_v14 = vpop.permute.xlu0 %92 }
 0x10f   :  { %v97_v15 = vmax.f32 %v86_v11, %v93_v14 }
 0x111   :  { %99 = vst.msk [vmem:[#allocation7 + $0x8] sm:$0xff] %vm70_vm0, %v97_v15 }
 0x112   :  { %112 = dma.vmem_to_hbm [thread:$0]  %s105_s28, 256, %s107_s4, [#allocation4], %s218_s20, %s218_s20, %s219_s21  }
 0x113   :  { %215 = dma.done.wait [#allocation4], 256  }
 0x114   :  { %216 = vsyncadd [#allocation4], 4294967040 }
 0x115   :  { %117 = vsyncpa [#allocation3], 1 }
 0x116   :  { %118 = vsyncpa [#allocation6], 1 }
 0x117   :  { %119 = vsyncpa [#allocation4], 1 }

</bundles_post_ra>
